<compile_context>
chip_gen: v7x
topology: tpu7x:2x2x1
jax: 0.10.0
libtpu: 0.0.40
codegen_flags: <defaults>
</compile_context>

<pallas_src>
import functools
import math

import numpy as np
import jax
import jax.numpy as jnp
from jax.experimental import pallas as pl
from jax.experimental.pallas import tpu as pltpu


# ----------------------------------------------------------------------------
# Fused ResidualBlock kernel
# ----------------------------------------------------------------------------
def _residual_block_kernel(x_ref, w1_ref, wa_ref, wb_ref, wc_ref, m_ref, o_ref,
                           *, wpad, neg_slope):
    # x_ref : (B, C, Q)   B images; channels on sublanes, flat padded spatial
    #                     on lanes (Q = H * wpad, halo/pad columns are zero).
    # w1_ref: (half, 9*C)        packed c1
    # wa_ref: (C+half, 9*half)   packed [c5@distilled_c1 ; c2]
    # wb_ref: (C+dc,   9*half)   packed [c5@distilled_c2 ; c3]
    # wc_ref: (C,      9*dc)     packed  c5@out_c3
    # m_ref : (3, Q)   row0: interior (real-pixel) mask
    #                  row1: valid lanes after a +wpad roll (row-above taps)
    #                  row2: valid lanes after a -wpad roll (row-below taps)
    # o_ref : (B, C, Q)
    B, C, Q = x_ref.shape
    w1 = w1_ref[...]
    wa = wa_ref[...]
    wb = wb_ref[...]
    wc = wc_ref[...]
    masks = m_ref[...]
    m_int = masks[0:1]                       # (1, Q)
    m_up = masks[1:2]
    m_dn = masks[2:3]

    half = wa.shape[0] - C                   # feats // 2 (live rows of o1/o2)
    dc = wb.shape[0] - C                     # distilled channels (rows of o3)
    m_half = jnp.broadcast_to(m_int, (half, Q))   # hoisted (used twice)
    m_dc = jnp.broadcast_to(m_int, (dc, Q))

    def shifted(a, s):
        # out[q] = a[(q + s) mod Q]; pltpu.roll follows jnp.roll semantics
        # (out[i] = in[i - shift]), so shift = (-s) mod Q.
        r = (-s) % Q
        return a if r == 0 else pltpu.roll(a, r, 1)

    def tap_stack(a):
        # (9*Cl, Q) im2col slab from XLU lane rolls.  `a` must be zero on all
        # halo/pad columns (guaranteed by the input pad / the act mask), which
        # makes the +-1 column rolls safe; the +-wpad row rolls are masked so
        # top/bottom wraparound never leaks the opposite edge row.
        up = shifted(a, -wpad) * m_up        # row above
        dn = shifted(a, wpad) * m_dn         # row below
        taps = []
        for base in (up, a, dn):             # dh = -1, 0, +1
            for dw in (-1, 0, 1):
                taps.append(shifted(base, dw))
        return jnp.concatenate(taps, axis=0)

    def act(v, m):
        # LeakyReLU(neg_slope) then re-zero halo/pad columns so the next
        # conv's taps see a properly zero-padded input.
        return jnp.maximum(v, neg_slope * v) * m

    def dot(w, slab):
        return jnp.dot(w, slab, preferred_element_type=jnp.float32)

    for b in range(B):                       # small static unroll over images
        x = x_ref[b]                                        # (C, Q)
        o1 = act(dot(w1, tap_stack(x)), m_half)             # (half, Q)
        r_a = dot(wa, tap_stack(o1))                        # (C+half, Q)
        acc = r_a[:C]                                       # c5 @ distilled_c1
        o2 = act(r_a[C:], m_half)                           # (half, Q)
        r_b = dot(wb, tap_stack(o2))                        # (C+dc, Q)
        acc = acc + r_b[:C]                                 # + c5 @ distilled_c2
        o3 = act(r_b[C:], m_dc)                             # (dc, Q)
        acc = acc + dot(wc, tap_stack(o3))                  # + c5 @ out_c3
        o_ref[b] = (acc + x).astype(o_ref.dtype)            # residual add


# ----------------------------------------------------------------------------
# Forward wrapper (one pallas_call for the whole block)
# ----------------------------------------------------------------------------
def residual_block_forward(x_nchw, packed, masks, images_per_step=None):
    w1p, wap, wbp, wcp = packed
    N, C, H, W = x_nchw.shape
    Q = masks.shape[-1]
    wpad = Q // H                                    # padded row width

    if images_per_step is None:
        # Keep >=2 grid blocks when possible (v7x: 2 TCs share the batch) and
        # batch the rest into each step (v5e/v6e: one TC, amortize overhead).
        images_per_step = max(1, N // 2)
    while N % images_per_step:
        images_per_step -= 1
    B = images_per_step

    # one-time zero pad (left halo + right halo/pad) + flatten spatial on lanes
    xp = jnp.pad(x_nchw, ((0, 0), (0, 0), (0, 0), (1, wpad - W - 1)))
    xp = xp.reshape(N, C, Q)

    kernel = functools.partial(_residual_block_kernel, wpad=wpad,
                               neg_slope=0.05)
    out_flat = pl.pallas_call(
        kernel,
        out_shape=jax.ShapeDtypeStruct((N, C, Q), x_nchw.dtype),
        grid=(N // B,),
        in_specs=[
            pl.BlockSpec((B, C, Q), lambda n: (n, 0, 0)),
            pl.BlockSpec(w1p.shape, lambda n: (0, 0)),    # resident weights
            pl.BlockSpec(wap.shape, lambda n: (0, 0)),
            pl.BlockSpec(wbp.shape, lambda n: (0, 0)),
            pl.BlockSpec(wcp.shape, lambda n: (0, 0)),
            pl.BlockSpec(masks.shape, lambda n: (0, 0)),  # resident masks
        ],
        out_specs=pl.BlockSpec((B, C, Q), lambda n: (n, 0, 0)),
        compiler_params=pltpu.CompilerParams(
            dimension_semantics=("parallel",)),
    )(xp, w1p, wap, wbp, wcp, masks)

    # drop halo/pad columns, back to NCHW
    return out_flat.reshape(N, C, H, wpad)[:, :, :, 1:W + 1]


# ----------------------------------------------------------------------------
# Host-side glue: layout choice, weight_norm reparam, weight packing, masks
# ----------------------------------------------------------------------------
def choose_wpad(H, W):
    """Smallest padded row width >= W+2 that makes Q = H*wpad a multiple of 128."""
    unit = 128 // math.gcd(H, 128)
    wpad = -(-(W + 2) // unit) * unit
    if wpad > 2 * (W + 2):           # don't blow up memory for awkward H
        wpad = W + 2
    return wpad


def make_weight(key, cout, cin, scale=0.1):
    """OIHW weight with torch weight_norm(dim=0) init semantics (g = ||v||)."""
    v = jax.random.normal(key, (cout, cin, 3, 3), jnp.float32) * scale
    norm = jnp.sqrt(jnp.sum(v * v, axis=(1, 2, 3), keepdims=True))
    return norm * v / norm                      # effective weight (== v at init)


def _pack_taps(w_oihw, live_rows, in_off):
    """(cout, cin, 3, 3) -> (cout, 9*live_rows): column = tap*live_rows + row."""
    w = np.asarray(w_oihw, np.float32)
    cout, cin, kh, kw = w.shape
    buf = np.zeros((cout, kh * kw * live_rows), np.float32)
    for a in range(kh):
        for b in range(kw):
            t = a * kw + b
            buf[:, t * live_rows + in_off: t * live_rows + in_off + cin] = \
                w[:, :, a, b]
    return buf


def pack_weights(w1, w2, w3, w5, feats, dc):
    """Fold split/concat into weight packing and fuse dots that share a slab."""
    half = feats // 2
    w5 = np.asarray(w5, np.float32)
    w1p = _pack_taps(w1, feats, 0)                              # c1 reads x
    wap = np.concatenate([_pack_taps(w5[:, 0:dc], half, 0),     # c5 @ d1 (o1[:dc])
                          _pack_taps(w2, half, dc)], axis=0)    # c2 @ r1 (o1[dc:])
    wbp = np.concatenate([_pack_taps(w5[:, dc:2 * dc], half, 0),  # c5 @ d2
                          _pack_taps(w3, half, dc)], axis=0)      # c3 @ r2
    wcp = _pack_taps(w5[:, 2 * dc:3 * dc], dc, 0)               # c5 @ out_c3
    return tuple(jnp.asarray(a) for a in (w1p, wap, wbp, wcp))


def make_masks(H, W, wpad):
    Q = H * wpad
    interior = np.zeros((H, wpad), np.float32)
    interior[:, 1:W + 1] = 1.0
    lane = np.arange(Q)
    up_ok = (lane >= wpad).astype(np.float32)        # valid after +wpad roll
    dn_ok = (lane < Q - wpad).astype(np.float32)     # valid after -wpad roll
    return jnp.asarray(np.stack([interior.reshape(Q), up_ok, dn_ok], axis=0))


# ----------------------------------------------------------------------------
# Pure-JAX reference (for correctness check)
# ----------------------------------------------------------------------------
def _ref_conv(x, w):
    return jax.lax.conv_general_dilated(
        x, w, window_strides=(1, 1), padding=((1, 1), (1, 1)),
        dimension_numbers=("NCHW", "OIHW", "NCHW"))


def residual_block_reference(x, params, dc):
    w1, w2, w3, w5 = params
    act = lambda t: jnp.where(t > 0, t, 0.05 * t)
    o1 = act(_ref_conv(x, w1))
    d1, r1 = o1[:, :dc], o1[:, dc:]
    o2 = act(_ref_conv(r1, w2))
    d2, r2 = o2[:, :dc], o2[:, dc:]
    o3 = act(_ref_conv(r2, w3))
    cat = jnp.concatenate([d1, d2, o3], axis=1)
    return _ref_conv(cat, w5) + x


# ----------------------------------------------------------------------------
if __name__ == "__main__":
    feats = 8
    N, H, W = 2, 16, 16
    distilled_channels = int(feats // 2 * 0.5)                    # 2
    remaining_channels = feats // 2 - distilled_channels          # 2

    key = jax.random.PRNGKey(0)
    k1, k2, k3, k5, kx = jax.random.split(key, 5)

    w1 = make_weight(k1, feats // 2, feats)                       # 8 -> 4
    w2 = make_weight(k2, feats // 2, remaining_channels)          # 2 -> 4
    w3 = make_weight(k3, distilled_channels, remaining_channels)  # 2 -> 2
    w5 = make_weight(k5, feats, distilled_channels * 3)           # 6 -> 8

    wpad = choose_wpad(H, W)                                      # 24 -> Q=384
    packed = pack_weights(w1, w2, w3, w5, feats, distilled_channels)
    masks = make_masks(H, W, wpad)

    x = jax.random.normal(kx, (N, feats, H, W), jnp.float32)      # NCHW

    fwd = jax.jit(residual_block_forward)
    out = jax.block_until_ready(fwd(x, packed, masks))

    ref = jax.block_until_ready(
        residual_block_reference(x, (w1, w2, w3, w5), distilled_channels))
    np.testing.assert_allclose(np.asarray(out), np.asarray(ref),
                               atol=5e-4, rtol=5e-4)

    print("KERNEL_OK")
</pallas_src>

<mosaic_0001>
module attributes {stable_mosaic.version = 11 : i64} {
  func.func @_residual_block_kernel(%arg0: i32, %arg1: memref<1x8x384xf32, #tpu.memory_space<vmem>>, %arg2: memref<4x72xf32, #tpu.memory_space<vmem>>, %arg3: memref<12x36xf32, #tpu.memory_space<vmem>>, %arg4: memref<10x36xf32, #tpu.memory_space<vmem>>, %arg5: memref<8x18xf32, #tpu.memory_space<vmem>>, %arg6: memref<3x384xf32, #tpu.memory_space<vmem>>, %arg7: memref<1x8x384xf32, #tpu.memory_space<vmem>>) attributes {dimension_semantics = [#tpu.dimension_semantics<parallel>], iteration_bounds = array<i64: 2>, scalar_prefetch = 0 : i64, scratch_operands = 0 : i64, tpu.core_type = #tpu.core_type<tc>, window_params = [{transform_indices = @transform_0, window_bounds = array<i64: 1, 8, 384>}, {pipeline_mode = #tpu.pipeline_mode<synchronous>, transform_indices = @transform_1, window_bounds = array<i64: 4, 72>}, {pipeline_mode = #tpu.pipeline_mode<synchronous>, transform_indices = @transform_2, window_bounds = array<i64: 12, 36>}, {pipeline_mode = #tpu.pipeline_mode<synchronous>, transform_indices = @transform_3, window_bounds = array<i64: 10, 36>}, {pipeline_mode = #tpu.pipeline_mode<synchronous>, transform_indices = @transform_4, window_bounds = array<i64: 8, 18>}, {pipeline_mode = #tpu.pipeline_mode<synchronous>, transform_indices = @transform_5, window_bounds = array<i64: 3, 384>}, {transform_indices = @transform_6, window_bounds = array<i64: 1, 8, 384>}]} {
    %c0 = arith.constant 0 : index
    %c0_0 = arith.constant 0 : index
    %0 = vector.load %arg2[%c0, %c0_0] : memref<4x72xf32, #tpu.memory_space<vmem>>, vector<4x72xf32>
    %c0_1 = arith.constant 0 : index
    %c0_2 = arith.constant 0 : index
    %1 = vector.load %arg3[%c0_1, %c0_2] : memref<12x36xf32, #tpu.memory_space<vmem>>, vector<12x36xf32>
    %c0_3 = arith.constant 0 : index
    %c0_4 = arith.constant 0 : index
    %2 = vector.load %arg4[%c0_3, %c0_4] : memref<10x36xf32, #tpu.memory_space<vmem>>, vector<10x36xf32>
    %c0_5 = arith.constant 0 : index
    %c0_6 = arith.constant 0 : index
    %3 = vector.load %arg5[%c0_5, %c0_6] : memref<8x18xf32, #tpu.memory_space<vmem>>, vector<8x18xf32>
    %c0_7 = arith.constant 0 : index
    %c0_8 = arith.constant 0 : index
    %4 = vector.load %arg6[%c0_7, %c0_8] : memref<3x384xf32, #tpu.memory_space<vmem>>, vector<3x384xf32>
    %5 = vector.extract_strided_slice %4 {offsets = [0, 0], sizes = [1, 384], strides = [1, 1]} : vector<3x384xf32> to vector<1x384xf32>
    %6 = vector.extract_strided_slice %4 {offsets = [1, 0], sizes = [1, 384], strides = [1, 1]} : vector<3x384xf32> to vector<1x384xf32>
    %7 = vector.extract_strided_slice %4 {offsets = [2, 0], sizes = [1, 384], strides = [1, 1]} : vector<3x384xf32> to vector<1x384xf32>
    %8 = vector.shape_cast %5 : vector<1x384xf32> to vector<1x384xf32>
    %9 = vector.broadcast %8 : vector<1x384xf32> to vector<4x384xf32>
    %10 = vector.shape_cast %5 : vector<1x384xf32> to vector<1x384xf32>
    %11 = vector.broadcast %10 : vector<1x384xf32> to vector<2x384xf32>
    %c0_9 = arith.constant 0 : index
    %c0_10 = arith.constant 0 : index
    %c0_11 = arith.constant 0 : index
    %12 = vector.load %arg1[%c0_9, %c0_10, %c0_11] : memref<1x8x384xf32, #tpu.memory_space<vmem>>, vector<1x8x384xf32>
    %13 = vector.shape_cast %12 : vector<1x8x384xf32> to vector<8x384xf32>
    %c24_i32 = arith.constant 24 : i32
    %14 = tpu.dynamic_rotate %13 by %c24_i32 dim 1 : vector<8x384xf32>, i32 -> vector<8x384xf32>
    %15 = vector.broadcast %6 : vector<1x384xf32> to vector<8x384xf32>
    %16 = arith.mulf %14, %15 : vector<8x384xf32>
    %c360_i32 = arith.constant 360 : i32
    %17 = tpu.dynamic_rotate %13 by %c360_i32 dim 1 : vector<8x384xf32>, i32 -> vector<8x384xf32>
    %18 = vector.broadcast %7 : vector<1x384xf32> to vector<8x384xf32>
    %19 = arith.mulf %17, %18 : vector<8x384xf32>
    %c1_i32 = arith.constant 1 : i32
    %20 = tpu.dynamic_rotate %16 by %c1_i32 dim 1 : vector<8x384xf32>, i32 -> vector<8x384xf32>
    %c383_i32 = arith.constant 383 : i32
    %21 = tpu.dynamic_rotate %16 by %c383_i32 dim 1 : vector<8x384xf32>, i32 -> vector<8x384xf32>
    %c1_i32_12 = arith.constant 1 : i32
    %22 = tpu.dynamic_rotate %13 by %c1_i32_12 dim 1 : vector<8x384xf32>, i32 -> vector<8x384xf32>
    %c383_i32_13 = arith.constant 383 : i32
    %23 = tpu.dynamic_rotate %13 by %c383_i32_13 dim 1 : vector<8x384xf32>, i32 -> vector<8x384xf32>
    %c1_i32_14 = arith.constant 1 : i32
    %24 = tpu.dynamic_rotate %19 by %c1_i32_14 dim 1 : vector<8x384xf32>, i32 -> vector<8x384xf32>
    %c383_i32_15 = arith.constant 383 : i32
    %25 = tpu.dynamic_rotate %19 by %c383_i32_15 dim 1 : vector<8x384xf32>, i32 -> vector<8x384xf32>
    %26 = tpu.concatenate %20, %16, %21, %22, %13, %23, %24, %19, %25 in 0 : vector<8x384xf32>, vector<8x384xf32>, vector<8x384xf32>, vector<8x384xf32>, vector<8x384xf32>, vector<8x384xf32>, vector<8x384xf32>, vector<8x384xf32>, vector<8x384xf32> -> vector<72x384xf32>
    %cst = arith.constant dense<0.000000e+00> : vector<4x384xf32>
    %27 = tpu.matmul %0, %26, %cst {dimension_numbers = #tpu.dot_dimension_numbers<[1], [0], [0], [1], [0, 0, 1, 1], [], []>} : vector<4x72xf32>, vector<72x384xf32>, vector<4x384xf32> -> vector<4x384xf32>
    %cst_16 = arith.constant 5.000000e-02 : f32
    %28 = vector.broadcast %cst_16 : f32 to vector<4x384xf32>
    %29 = arith.mulf %28, %27 : vector<4x384xf32>
    %30 = arith.maximumf %27, %29 : vector<4x384xf32>
    %31 = arith.mulf %30, %9 : vector<4x384xf32>
    %c24_i32_17 = arith.constant 24 : i32
    %32 = tpu.dynamic_rotate %31 by %c24_i32_17 dim 1 : vector<4x384xf32>, i32 -> vector<4x384xf32>
    %33 = vector.broadcast %6 : vector<1x384xf32> to vector<4x384xf32>
    %34 = arith.mulf %32, %33 : vector<4x384xf32>
    %c360_i32_18 = arith.constant 360 : i32
    %35 = tpu.dynamic_rotate %31 by %c360_i32_18 dim 1 : vector<4x384xf32>, i32 -> vector<4x384xf32>
    %36 = vector.broadcast %7 : vector<1x384xf32> to vector<4x384xf32>
    %37 = arith.mulf %35, %36 : vector<4x384xf32>
    %c1_i32_19 = arith.constant 1 : i32
    %38 = tpu.dynamic_rotate %34 by %c1_i32_19 dim 1 : vector<4x384xf32>, i32 -> vector<4x384xf32>
    %c383_i32_20 = arith.constant 383 : i32
    %39 = tpu.dynamic_rotate %34 by %c383_i32_20 dim 1 : vector<4x384xf32>, i32 -> vector<4x384xf32>
    %c1_i32_21 = arith.constant 1 : i32
    %40 = tpu.dynamic_rotate %31 by %c1_i32_21 dim 1 : vector<4x384xf32>, i32 -> vector<4x384xf32>
    %c383_i32_22 = arith.constant 383 : i32
    %41 = tpu.dynamic_rotate %31 by %c383_i32_22 dim 1 : vector<4x384xf32>, i32 -> vector<4x384xf32>
    %c1_i32_23 = arith.constant 1 : i32
    %42 = tpu.dynamic_rotate %37 by %c1_i32_23 dim 1 : vector<4x384xf32>, i32 -> vector<4x384xf32>
    %c383_i32_24 = arith.constant 383 : i32
    %43 = tpu.dynamic_rotate %37 by %c383_i32_24 dim 1 : vector<4x384xf32>, i32 -> vector<4x384xf32>
    %44 = tpu.concatenate %38, %34, %39, %40, %31, %41, %42, %37, %43 in 0 : vector<4x384xf32>, vector<4x384xf32>, vector<4x384xf32>, vector<4x384xf32>, vector<4x384xf32>, vector<4x384xf32>, vector<4x384xf32>, vector<4x384xf32>, vector<4x384xf32> -> vector<36x384xf32>
    %cst_25 = arith.constant dense<0.000000e+00> : vector<12x384xf32>
    %45 = tpu.matmul %1, %44, %cst_25 {dimension_numbers = #tpu.dot_dimension_numbers<[1], [0], [0], [1], [0, 0, 1, 1], [], []>} : vector<12x36xf32>, vector<36x384xf32>, vector<12x384xf32> -> vector<12x384xf32>
    %46 = vector.extract_strided_slice %45 {offsets = [0, 0], sizes = [8, 384], strides = [1, 1]} : vector<12x384xf32> to vector<8x384xf32>
    %47 = vector.extract_strided_slice %45 {offsets = [8, 0], sizes = [4, 384], strides = [1, 1]} : vector<12x384xf32> to vector<4x384xf32>
    %cst_26 = arith.constant 5.000000e-02 : f32
    %48 = vector.broadcast %cst_26 : f32 to vector<4x384xf32>
    %49 = arith.mulf %48, %47 : vector<4x384xf32>
    %50 = arith.maximumf %47, %49 : vector<4x384xf32>
    %51 = arith.mulf %50, %9 : vector<4x384xf32>
    %c24_i32_27 = arith.constant 24 : i32
    %52 = tpu.dynamic_rotate %51 by %c24_i32_27 dim 1 : vector<4x384xf32>, i32 -> vector<4x384xf32>
    %53 = vector.broadcast %6 : vector<1x384xf32> to vector<4x384xf32>
    %54 = arith.mulf %52, %53 : vector<4x384xf32>
    %c360_i32_28 = arith.constant 360 : i32
    %55 = tpu.dynamic_rotate %51 by %c360_i32_28 dim 1 : vector<4x384xf32>, i32 -> vector<4x384xf32>
    %56 = vector.broadcast %7 : vector<1x384xf32> to vector<4x384xf32>
    %57 = arith.mulf %55, %56 : vector<4x384xf32>
    %c1_i32_29 = arith.constant 1 : i32
    %58 = tpu.dynamic_rotate %54 by %c1_i32_29 dim 1 : vector<4x384xf32>, i32 -> vector<4x384xf32>
    %c383_i32_30 = arith.constant 383 : i32
    %59 = tpu.dynamic_rotate %54 by %c383_i32_30 dim 1 : vector<4x384xf32>, i32 -> vector<4x384xf32>
    %c1_i32_31 = arith.constant 1 : i32
    %60 = tpu.dynamic_rotate %51 by %c1_i32_31 dim 1 : vector<4x384xf32>, i32 -> vector<4x384xf32>
    %c383_i32_32 = arith.constant 383 : i32
    %61 = tpu.dynamic_rotate %51 by %c383_i32_32 dim 1 : vector<4x384xf32>, i32 -> vector<4x384xf32>
    %c1_i32_33 = arith.constant 1 : i32
    %62 = tpu.dynamic_rotate %57 by %c1_i32_33 dim 1 : vector<4x384xf32>, i32 -> vector<4x384xf32>
    %c383_i32_34 = arith.constant 383 : i32
    %63 = tpu.dynamic_rotate %57 by %c383_i32_34 dim 1 : vector<4x384xf32>, i32 -> vector<4x384xf32>
    %64 = tpu.concatenate %58, %54, %59, %60, %51, %61, %62, %57, %63 in 0 : vector<4x384xf32>, vector<4x384xf32>, vector<4x384xf32>, vector<4x384xf32>, vector<4x384xf32>, vector<4x384xf32>, vector<4x384xf32>, vector<4x384xf32>, vector<4x384xf32> -> vector<36x384xf32>
    %cst_35 = arith.constant dense<0.000000e+00> : vector<10x384xf32>
    %65 = tpu.matmul %2, %64, %cst_35 {dimension_numbers = #tpu.dot_dimension_numbers<[1], [0], [0], [1], [0, 0, 1, 1], [], []>} : vector<10x36xf32>, vector<36x384xf32>, vector<10x384xf32> -> vector<10x384xf32>
    %66 = vector.extract_strided_slice %65 {offsets = [0, 0], sizes = [8, 384], strides = [1, 1]} : vector<10x384xf32> to vector<8x384xf32>
    %67 = arith.addf %46, %66 : vector<8x384xf32>
    %68 = vector.extract_strided_slice %65 {offsets = [8, 0], sizes = [2, 384], strides = [1, 1]} : vector<10x384xf32> to vector<2x384xf32>
    %cst_36 = arith.constant 5.000000e-02 : f32
    %69 = vector.broadcast %cst_36 : f32 to vector<2x384xf32>
    %70 = arith.mulf %69, %68 : vector<2x384xf32>
    %71 = arith.maximumf %68, %70 : vector<2x384xf32>
    %72 = arith.mulf %71, %11 : vector<2x384xf32>
    %c24_i32_37 = arith.constant 24 : i32
    %73 = tpu.dynamic_rotate %72 by %c24_i32_37 dim 1 : vector<2x384xf32>, i32 -> vector<2x384xf32>
    %74 = vector.broadcast %6 : vector<1x384xf32> to vector<2x384xf32>
    %75 = arith.mulf %73, %74 : vector<2x384xf32>
    %c360_i32_38 = arith.constant 360 : i32
    %76 = tpu.dynamic_rotate %72 by %c360_i32_38 dim 1 : vector<2x384xf32>, i32 -> vector<2x384xf32>
    %77 = vector.broadcast %7 : vector<1x384xf32> to vector<2x384xf32>
    %78 = arith.mulf %76, %77 : vector<2x384xf32>
    %c1_i32_39 = arith.constant 1 : i32
    %79 = tpu.dynamic_rotate %75 by %c1_i32_39 dim 1 : vector<2x384xf32>, i32 -> vector<2x384xf32>
    %c383_i32_40 = arith.constant 383 : i32
    %80 = tpu.dynamic_rotate %75 by %c383_i32_40 dim 1 : vector<2x384xf32>, i32 -> vector<2x384xf32>
    %c1_i32_41 = arith.constant 1 : i32
    %81 = tpu.dynamic_rotate %72 by %c1_i32_41 dim 1 : vector<2x384xf32>, i32 -> vector<2x384xf32>
    %c383_i32_42 = arith.constant 383 : i32
    %82 = tpu.dynamic_rotate %72 by %c383_i32_42 dim 1 : vector<2x384xf32>, i32 -> vector<2x384xf32>
    %c1_i32_43 = arith.constant 1 : i32
    %83 = tpu.dynamic_rotate %78 by %c1_i32_43 dim 1 : vector<2x384xf32>, i32 -> vector<2x384xf32>
    %c383_i32_44 = arith.constant 383 : i32
    %84 = tpu.dynamic_rotate %78 by %c383_i32_44 dim 1 : vector<2x384xf32>, i32 -> vector<2x384xf32>
    %85 = tpu.concatenate %79, %75, %80, %81, %72, %82, %83, %78, %84 in 0 : vector<2x384xf32>, vector<2x384xf32>, vector<2x384xf32>, vector<2x384xf32>, vector<2x384xf32>, vector<2x384xf32>, vector<2x384xf32>, vector<2x384xf32>, vector<2x384xf32> -> vector<18x384xf32>
    %cst_45 = arith.constant dense<0.000000e+00> : vector<8x384xf32>
    %86 = tpu.matmul %3, %85, %cst_45 {dimension_numbers = #tpu.dot_dimension_numbers<[1], [0], [0], [1], [0, 0, 1, 1], [], []>} : vector<8x18xf32>, vector<18x384xf32>, vector<8x384xf32> -> vector<8x384xf32>
    %87 = arith.addf %67, %86 : vector<8x384xf32>
    %88 = arith.addf %87, %13 : vector<8x384xf32>
    %c0_46 = arith.constant 0 : index
    %c0_47 = arith.constant 0 : index
    %c0_48 = arith.constant 0 : index
    %89 = vector.load %arg7[%c0_46, %c0_47, %c0_48] : memref<1x8x384xf32, #tpu.memory_space<vmem>>, vector<1x8x384xf32>
    %90 = vector.shape_cast %89 : vector<1x8x384xf32> to vector<8x384xf32>
    %91 = vector.shape_cast %88 : vector<8x384xf32> to vector<1x8x384xf32>
    tpu.vector_store %arg7[%c0_46, %c0_47, %c0_48], %91 {strides = array<i32>} : memref<1x8x384xf32, #tpu.memory_space<vmem>>, vector<1x8x384xf32>,
    return
  }
  func.func @transform_0(%arg0: i32) -> (i32, i32, i32) {
    %c0_i32 = arith.constant 0 : i32
    %c0_i32_0 = arith.constant 0 : i32
    %c0_i32_1 = arith.constant 0 : i32
    return %arg0, %c0_i32, %c0_i32_0 : i32, i32, i32
  }
  func.func @transform_1(%arg0: i32) -> (i32, i32) {
    %c0_i32 = arith.constant 0 : i32
    %c0_i32_0 = arith.constant 0 : i32
    %c0_i32_1 = arith.constant 0 : i32
    return %c0_i32, %c0_i32_0 : i32, i32
  }
  func.func @transform_2(%arg0: i32) -> (i32, i32) {
    %c0_i32 = arith.constant 0 : i32
    %c0_i32_0 = arith.constant 0 : i32
    %c0_i32_1 = arith.constant 0 : i32
    return %c0_i32, %c0_i32_0 : i32, i32
  }
  func.func @transform_3(%arg0: i32) -> (i32, i32) {
    %c0_i32 = arith.constant 0 : i32
    %c0_i32_0 = arith.constant 0 : i32
    %c0_i32_1 = arith.constant 0 : i32
    return %c0_i32, %c0_i32_0 : i32, i32
  }
  func.func @transform_4(%arg0: i32) -> (i32, i32) {
    %c0_i32 = arith.constant 0 : i32
    %c0_i32_0 = arith.constant 0 : i32
    %c0_i32_1 = arith.constant 0 : i32
    return %c0_i32, %c0_i32_0 : i32, i32
  }
  func.func @transform_5(%arg0: i32) -> (i32, i32) {
    %c0_i32 = arith.constant 0 : i32
    %c0_i32_0 = arith.constant 0 : i32
    %c0_i32_1 = arith.constant 0 : i32
    return %c0_i32, %c0_i32_0 : i32, i32
  }
  func.func @transform_6(%arg0: i32) -> (i32, i32, i32) {
    %c0_i32 = arith.constant 0 : i32
    %c0_i32_0 = arith.constant 0 : i32
    %c0_i32_1 = arith.constant 0 : i32
    return %arg0, %c0_i32, %c0_i32_0 : i32, i32, i32
  }
}

</mosaic_0001>

<bundles_post_ra>
// kernel: residual_block_forward.1
= control target key start
LH: loop header
LB: loop body
LE: loop exit
PB: predicated region body
PF: predicated region fallthrough
CT: control target
= control target key end

     0   :  { %s1957_s21 = smov 0   ;;  %s2625_s0 = inlined_call_operand.vmem [shape: f32[2,8,384], index: 0, kind: input, shape index: {}]   ;;  %s2626_s1 = inlined_call_operand.vmem [shape: f32[4,72], index: 1, kind: input, shape index: {}]   ;;  %s2627_s2 = inlined_call_operand.vmem [shape: f32[12,36], index: 2, kind: input, shape index: {}]   ;;  %s2628_s3 = inlined_call_operand.vmem [shape: f32[10,36], index: 3, kind: input, shape index: {}]   ;;  %s2629_s4 = inlined_call_operand.vmem [shape: f32[8,18], index: 4, kind: input, shape index: {}]   ;;  %s2630_s5 = inlined_call_operand.vmem [shape: f32[3,384], index: 5, kind: input, shape index: {}]   ;;  %s2631_s6 = inlined_call_operand.vmem [shape: f32[2,8,384], index: 6, kind: output, shape index: {}]  }
   0x1 LB: > { %s1563_s22 = sadd.s32 4294967295, %s1913_s21   ;;  %p1567_p0 = scmp.ge.s32.totalorder %s1913_s21, 1  ;;  %s1913_s21 = sphi %s1957_s21, %s16_s21  }
   0x2   : > { %p212_p1 = scmp.lt.s32.totalorder %s1913_s21, 3 }
   0x4   : > { %p213_p2 = pnand %p1567_p0, %p212_p1 }
   0x5   : > { %p242_p3 = scmp.lt.s32.totalorder (!%p213_p2), %s1563_s22, 1  ;;  %s1915_s27 = smov (!%p213_p2), 24   ;;  %v262_v3 = vlaneseq (!%p213_p2)  ;;  %v2003_v7 = vld [vmem:[%s2630_s5] sm:$0x77] (!%p213_p2)  ;;  %v2008_v8 = vld [vmem:[%s2630_s5 + $0x8] sm:$0x7] (!%p213_p2) }
   0x6   : > { %216 = sbr.rel (%p213_p2) target bundleno = 1946 (0x79a), region = 44  ;;  %s1916_s28 = smov (!%p213_p2), 104   ;;  %v1917_v16 = vmov (!%p213_p2), 0.0|0.0   ;;  %v1920_v50 = vmov (!%p213_p2), 0.0   ;;  %vm1921_vm2 = vmmov (!%p213_p2), 0   ;;  %vm430_vm5 = vcmask (!%p213_p2), 588800  }
   0x7   : > { %v1996_v4 = vshrl.u32 (!%p213_p2), %v262_v3, 7  ;;  %v2010_v9 = vand.u32 (!%p213_p2), 127, %v262_v3  ;;  %1693 = vmatprep.subr.bf16.mxu1 (!%p213_p2), %v1917_v16  ;;  %s1918_s9 = smov (!%p213_p2), 1   ;;  %s1919_s10 = smov (!%p213_p2), 127   ;;  %498 = vmatprep.mubr.f32.mxu0 (!%p213_p2), %v1920_v50  ;;  %vm711_vm6 = vcmask (!%p213_p2), 293888   ;;  %vm698_vm7 = vcmask (!%p213_p2), 1043456  }
   0x8   : > { %1639 = vmatprep.mubr.msk.f32.mxu1 (!%p213_p2), %vm1921_vm2, %v1920_v50  ;;  %vm1325_vm8 = vcmask (!%p213_p2), 1041408   ;;  %vm1332_vm9 = vcmask (!%p213_p2), 1045504   ;;  %vm1345_vm10 = vcmask (!%p213_p2), 146432  }
   0x9   : > { %v306_v5 = vsub.s32 (!%p213_p2), 1, %v1996_v4  ;;  %v310_v6 = vsub.s32 (!%p213_p2), 5, %v1996_v4  ;;  %vm300_vm0 = vcmp.lt.s32.totalorder (!%p213_p2), %v2010_v9, 24  ;;  %v346_v15 = vsub.s32 (!%p213_p2), 2, %v1996_v4 }
   0xa   : > { %v350_v20 = vsub.s32 (!%p213_p2), 6, %v1996_v4  ;;  %vm340_vm1 = vcmp.lt.s32.totalorder (!%p213_p2), %v2010_v9, 104  ;;  %vm380_vm3 = vcmp.lt.s32.totalorder (!%p213_p2), %v2010_v9, 1  ;;  %vm390_vm4 = vcmp.lt.s32.totalorder (!%p213_p2), %v2010_v9, 127 }
   0xb   : > { %v307_v10 = vrot.slane (!%p213_p2), %v2003_v7, %v306_v5  ;;  %v311_v11 = vrot.slane (!%p213_p2), %v2003_v7, %v310_v6  ;;  %v315_v12 = vrot.slane (!%p213_p2), %v2008_v8, %v306_v5  ;;  %v347_v26 = vrot.slane (!%p213_p2), %v2003_v7, %v346_v15 }
   0xc   : > { %v351_v30 = vrot.slane (!%p213_p2), %v2003_v7, %v350_v20  ;;  %v355_v41 = vrot.slane (!%p213_p2), %v2008_v8, %v346_v15 }
   0xd   : > { %s2633_s22 = smov (!%p242_p3, %s1563_s22), 1  ;;  %v2018_v17 = vrot.slane %v307_v10, %v306_v5  ;;  %v2020_v18 = vrot.slane %v311_v11, %v306_v5  ;;  %v2022_v19 = vrot.slane %v315_v12, %v306_v5  ;;  %v2045_v36 = vrot.slane %v347_v26, %v346_v15 }
   0xe   : > { %s1748_s23 = smul.u32 24, %s2633_s22  ;;  %v2047_v37 = vrot.slane %v351_v30, %v346_v15  ;;  %v2064_v45 = vrot.slane %v355_v41, %v346_v15 }
  0x10   : > { %s1973_s26 = scalar_lea.vmem %s2625_s0, %s1748_s23  ;;  %s251_s29 = scalar_lea.vmem %s2631_s6, %s1748_s23 }
  0x11   : > { %v1976_v0 = vld [vmem:[%s1973_s26 + $0x10] sm:$0xff]  ;;  %v1979_v1 = vld [vmem:[%s1973_s26] sm:$0xff]  ;;  %v1986_v2 = vld [vmem:[%s1973_s26 + $0x8] sm:$0xff] }
  0x12   : > { %296 = vrot.lane.b32.xlu1 %v1976_v0, %s1915_s27  ;;  %292 = vrot.lane.b32.xlu0 %v1979_v1, %s1915_s27  ;;  %v1774_v35 = vpack.i.bf16 %v1976_v0, %v1986_v2  ;;  %v1789_v44 = vpack.i.bf16 %v1979_v1, %v1976_v0 }
  0x16   : > { %294 = vrot.lane.b32.xlu0 %v1986_v2, %s1915_s27  ;;  %334 = vrot.lane.b32.xlu1 %v1979_v1, %s1916_s28 }
  0x1a   : > { %338 = vrot.lane.b32.xlu1 %v1976_v0, %s1916_s28  ;;  %336 = vrot.lane.b32.xlu0 %v1986_v2, %s1916_s28 }
  0x84   : > { %v297_v13 = vpop.permute.xlu1 %296  ;;  %v293_v14 = vpop.permute.xlu0 %292 }
  0x85   : > { %v303_v21 = vsel %vm300_vm0, %v297_v13, %v293_v14 }
  0x86   : > { %v2033_v27 = vmul.f32 %v2018_v17, %v303_v21 }
  0x88   : > { %v295_v22 = vpop.permute.xlu0 %294  ;;  %v335_v23 = vpop.permute.xlu1 %334  ;;  %v1784_v46 = vpack.i.bf16 %v1986_v2, %v2033_v27 }
  0x89   : > { %v301_v24 = vsel %vm300_vm0, %v295_v22, %v297_v13  ;;  %v302_v25 = vsel %vm300_vm0, %v293_v14, %v295_v22 }
  0x8a   : > { %v332_v28 = vmul.f32 %v2020_v18, %v302_v25  ;;  %v333_v29 = vmul.f32 %v2022_v19, %v301_v24 }
  0x8c   : > { %v1764_v31 = vpack.i.bf16 %v332_v28, %v2033_v27  ;;  %v1769_v32 = vpack.i.bf16 %v1979_v1, %v333_v29  ;;  %v339_v33 = vpop.permute.xlu1 %338  ;;  %v337_v34 = vpop.permute.xlu0 %336  ;;  %v1779_v40 = vpack.i.bf16 %v333_v29, %v332_v28 }
  0x8d   : > { %v341_v38 = vsel %vm340_vm1, %v337_v34, %v339_v33  ;;  %v342_v39 = vsel %vm340_vm1, %v335_v23, %v337_v34  ;;  %v343_v47 = vsel %vm340_vm1, %v339_v33, %v335_v23 }
  0x8e   : > { %1765 = vrot.lane.b32.xlu0 %v1764_v31, %s1918_s9  ;;  %1770 = vrot.lane.b32.xlu1 %v1769_v32, %s1918_s9  ;;  %v2057_v42 = vmul.f32 %v2045_v36, %v342_v39  ;;  %v2060_v43 = vmul.f32 %v2047_v37, %v341_v38  ;;  %v2075_v49 = vmul.f32 %v2064_v45, %v343_v47 }
  0x90   : > { %v1794_v48 = vpack.i.bf16 %v2060_v43, %v2057_v42 }
  0x92   : > { %1780 = vrot.lane.b32.xlu0 %v1779_v40, %s1919_s10  ;;  %1775 = vrot.lane.b32.xlu1 %v1774_v35, %s1918_s9 }
  0x96   : > { %1785 = vrot.lane.b32.xlu0 %v1784_v46, %s1919_s10  ;;  %1790 = vrot.lane.b32.xlu1 %v1789_v44, %s1919_s10 }
  0x9a   : > { %416 = vrot.lane.b32.xlu1 %v2075_v49, %s1918_s9  ;;  %1795 = vrot.lane.b32.xlu0 %v1794_v48, %s1918_s9 }
  0x9e   : > { %425 = vrot.lane.b32.xlu1 %v2075_v49, %s1919_s10  ;;  %423 = vrot.lane.b32.xlu0 %v2060_v43, %s1919_s10 }
  0xa2   : > { %421 = vrot.lane.b32.xlu0 %v2057_v42, %s1919_s10 }
 0x100   : > { %v1771_v51 = vpop.permute.xlu1 %1770  ;;  %v1766_v52 = vpop.permute.xlu0 %1765 }
 0x101   : > { %v1772_v53 = vunpack.i.l.bf16 %v1771_v51  ;;  %v1768_v54 = vunpack.i.h.bf16 %v1766_v52  ;;  %v1767_v55 = vunpack.i.l.bf16 %v1766_v52  ;;  %v1773_v3 = vunpack.i.h.bf16 %v1771_v51 }
 0x103   : > { %v382_v56 = vsel %vm380_vm3, %v1767_v55, %v1768_v54  ;;  %v381_v57 = vsel %vm380_vm3, %v1768_v54, %v1772_v53  ;;  %v383_v58 = vsel %vm380_vm3, %v1772_v53, %v1767_v55 }
 0x104   : > { %v1776_v59 = vpop.permute.xlu1 %1775  ;;  %v1781_v60 = vpop.permute.xlu0 %1780  ;;  %v1677_v61 = vpack.c.bf16 %v332_v28, %v382_v56  ;;  %v1694_v62 = vpack.c.bf16 %v333_v29, %v381_v57  ;;  %v1679_v63 = vpack.c.bf16 %v2033_v27, %v383_v58  ;;  %v268_v58 = vsub.s32 4, %v1996_v4 }
 0x105   : > { %v1777_v5 = vunpack.i.l.bf16 %v1776_v59  ;;  %v1783_v6 = vunpack.i.h.bf16 %v1781_v60  ;;  %v1782_v10 = vunpack.i.l.bf16 %v1781_v60  ;;  %v1778_v11 = vunpack.i.h.bf16 %v1776_v59 }
 0x106   : > { %1678 = vmatprep.subr.bf16.mxu0 %v1677_v61  ;;  %1695 = vmatpush3.bf16.msra.mxu1 %v1694_v62 }
 0x107   : > { %1680 = vmatpush1.bf16.msra.mxu0 %v1679_v63  ;;  %v391_v12 = vsel %vm390_vm4, %v1782_v10, %v1783_v6  ;;  %v401_v13 = vsel %vm380_vm3, %v1773_v3, %v1777_v5  ;;  %1696 = vmatprep.subr.bf16.mxu1 %v1917_v16  ;;  %v400_v21 = vsel %vm380_vm3, %v1777_v5, %v1778_v11 }
 0x108   : > { %v1791_v14 = vpop.permute.xlu1 %1790  ;;  %v1786_v15 = vpop.permute.xlu0 %1785  ;;  %v1681_v20 = vpack.c.bf16 %v401_v13, %v391_v12  ;;  %v402_v27 = vsel %vm380_vm3, %v1778_v11, %v1773_v3 }
 0x109   : > { %v1793_v22 = vunpack.i.h.bf16 %v1791_v14  ;;  %v1792_v23 = vunpack.i.l.bf16 %v1791_v14  ;;  %v1788_v24 = vunpack.i.h.bf16 %v1786_v15  ;;  %v1787_v25 = vunpack.i.l.bf16 %v1786_v15 }
 0x10a   : > { %1682 = vmatprep.subr.bf16.mxu0 %v1681_v20 }
 0x10b   : > { %v392_v26 = vsel %vm390_vm4, %v1787_v25, %v1782_v10  ;;  %v393_v28 = vsel %vm390_vm4, %v1783_v6, %v1787_v25  ;;  %v409_v29 = vsel %vm390_vm4, %v1788_v24, %v1792_v23  ;;  %v410_v39 = vsel %vm390_vm4, %v1793_v22, %v1788_v24 }
 0x10c   : > { %v1796_v30 = vpop.permute.xlu0 %1795  ;;  %v1683_v31 = vpack.c.bf16 %v402_v27, %v392_v26  ;;  %v1697_v32 = vpack.c.bf16 %v400_v21, %v393_v28  ;;  %v1685_v33 = vpack.c.bf16 %v409_v29, %v1986_v2  ;;  %v417_v34 = vpop.permute.xlu1 %416  ;;  %v411_v40 = vsel %vm390_vm4, %v1792_v23, %v1793_v22 }
 0x10d   : > { %v1798_v35 = vunpack.i.h.bf16 %v1796_v30  ;;  %v1797_v38 = vunpack.i.l.bf16 %v1796_v30  ;;  %v1700_v41 = vpack.c.bf16 %v411_v40, %v1976_v0  ;;  %v1687_v46 = vpack.c.bf16 %v410_v39, %v1979_v1 }
 0x10e   : > { %1684 = vmatpush1.bf16.msra.mxu0 %v1683_v31  ;;  %1698 = vmatpush3.bf16.msra.mxu1 %v1697_v32  ;;  %v269_v6 = vrot.slane %v2003_v7, %v268_v58 }
 0x10f   : > { %1686 = vmatprep.subr.bf16.mxu0 %v1685_v33  ;;  %1699 = vmatprep.subr.bf16.mxu1 %v1917_v16  ;;  %v419_v44 = vsel %vm380_vm3, %v1797_v38, %v1798_v35  ;;  %v420_v48 = vsel %vm380_vm3, %v417_v34, %v1797_v38  ;;  %v418_v51 = vsel %vm380_vm3, %v1798_v35, %v417_v34 }
 0x110   : > { %v424_v2 = vpop.permute.xlu0 %423  ;;  %v1689_v47 = vpack.c.bf16 %v2060_v43, %v419_v44  ;;  %v426_v0 = vpop.permute.xlu1 %425  ;;  %v1691_v52 = vpack.c.bf16 %v2057_v42, %v420_v48  ;;  %v1703_v53 = vpack.c.bf16 %v2075_v49, %v418_v51  ;;  %v252_v43 = vld [vmem:[%s2626_s1] sm:$0xf]  ;;  %v264_v49 = vsub.s32 0, %v1996_v4 }
 0x111   : > { %v427_v1 = vsel %vm390_vm4, %v424_v2, %v426_v0 }
 0x112   : > { %1688 = vmatpush1.bf16.msra.mxu0 %v1687_v46  ;;  %1701 = vmatpush3.bf16.msra.mxu1 %v1700_v41  ;;  %v265_v56 = vrot.slane %v2003_v7, %v264_v49  ;;  %v273_v57 = vrot.slane %v2008_v8, %v264_v49  ;;  %v2157_v8 = vrot.slane %v269_v6, %v264_v49 }
 0x113   : > { %1690 = vmatprep.subr.bf16.mxu0 %v1689_v47  ;;  %1702 = vmatprep.subr.bf16.mxu1 %v1917_v16  ;;  %v2223_v47 = vld [vmem:[%s2627_s2] sm:$0xff] }
 0x114   : > { %v422_v54 = vpop.permute.xlu0 %421  ;;  %v2146_v59 = vrot.slane %v265_v56, %v264_v49  ;;  %v2148_v63 = vrot.slane %v273_v57, %v264_v49 }
 0x115   : > { %v428_v55 = vsel %vm390_vm4, %v422_v54, %v424_v2  ;;  %v429_v42 = vsel %vm390_vm4, %v426_v0, %v422_v54 }
 0x116   : > { %1692 = vmatpush1.bf16.msra.mxu0 %v1691_v52  ;;  %1704 = vmatpush3.bf16.msra.mxu1 %v1703_v53 }
 0x117   : > { %450 = vmatprep.subr.mxu0 %v427_v1  ;;  %1637 = vmatprep.subr.mxu1 %v1920_v50 }
 0x11a   : > { %451 = vmatpush1.msra.mxu0 %v428_v55  ;;  %1638 = vmatpush3.msra.mxu1 %v429_v42 }
 0x11b   : > { %1570 = vmatmul.mubr.msk.f32.vlgmr.msra.gmra.mrb[0].mxu0 %vm430_vm5, %v252_v43  ;;  %1640 = vmatmul.mubr.msk.f32.vlgmr.msra.gmra.mrb[0].mxu1 %vm430_vm5, %v252_v43 }
 0x11c   : > { %791 = vmatprep.mubr.f32.mxu0 %v1920_v50  ;;  %1652 = vmatprep.mubr.msk.f32.mxu1 %vm711_vm6, %v2223_v47 }
 0x1ee   : > { %v500_v60 = vpop.f32.mrb[0].mxu0  ;;  %v571_v61 = vpop.f32.mrb[0].mxu1 }
 0x1ef   : > { %v575_v62 = vmul.f32 0.05, %v500_v60  ;;  %v577_v3 = vmul.f32 0.05, %v571_v61  ;;  %v1641_v5 = vpop.f32.mrb[1].mxu1  ;;  %v502_v10 = vpop.f32.mrb[1].mxu0 }
 0x1f0   : > { %v576_v11 = vmul.f32 0.05, %v502_v10 }
 0x1f1   : > { %v578_v12 = vmax.f32 %v500_v60, %v575_v62  ;;  %v580_v13 = vmax.f32 %v571_v61, %v577_v3 }
 0x1f2   : > { %v579_v15 = vmax.f32 %v502_v10, %v576_v11 }
 0x1f3   : > { %v2152_v14 = vmul.f32 %v578_v12, %v2146_v59  ;;  %v2155_v4 = vmul.f32 %v580_v13, %v2148_v63 }
 0x1f4   : > { %v2164_v7 = vmul.f32 %v579_v15, %v2157_v8 }
 0x1f5   : > { %588 = vrot.lane.b32.xlu1 %v2155_v4, %s1915_s27  ;;  %596 = vrot.lane.b32.xlu0 %v2152_v14, %s1916_s28  ;;  %v1824_v2 = vpack.i.bf16 %v2152_v14, %v2155_v4 }
 0x1f6   : > { %v1799_v20 = vpack.i.bf16 %v2164_v7, %v2152_v14 }
 0x1f9   : > { %584 = vrot.lane.b32.xlu1 %v2152_v14, %s1915_s27  ;;  %586 = vrot.lane.b32.xlu0 %v2164_v7, %s1915_s27 }
 0x1fd   : > { %598 = vrot.lane.b32.xlu1 %v2164_v7, %s1916_s28  ;;  %600 = vrot.lane.b32.xlu0 %v2155_v4, %s1916_s28 }
 0x201   : > { %1800 = vrot.lane.b32.xlu1 %v1799_v20, %s1918_s9 }
 0x267   : > { %v589_v21 = vpop.permute.xlu1 %588  ;;  %v597_v22 = vpop.permute.xlu0 %596 }
 0x26b   : > { %v585_v23 = vpop.permute.xlu1 %584  ;;  %v587_v24 = vpop.permute.xlu0 %586 }
 0x26c   : > { %v592_v25 = vsel %vm300_vm0, %v589_v21, %v585_v23  ;;  %v590_v26 = vsel %vm300_vm0, %v587_v24, %v589_v21  ;;  %v591_v27 = vsel %vm300_vm0, %v585_v23, %v587_v24 }
 0x26d   : > { %v2184_v28 = vmul.f32 %v592_v25, %v2018_v17  ;;  %v2187_v29 = vmul.f32 %v591_v27, %v2020_v18  ;;  %v2190_v30 = vmul.f32 %v590_v26, %v2022_v19 }
 0x26f   : > { %v599_v31 = vpop.permute.xlu1 %598  ;;  %v601_v32 = vpop.permute.xlu0 %600  ;;  %v1809_v33 = vpack.i.bf16 %v2164_v7, %v2184_v28  ;;  %v1804_v38 = vpack.i.bf16 %v2184_v28, %v2155_v4  ;;  %v1814_v41 = vpack.i.bf16 %v2190_v30, %v2187_v29  ;;  %v665_v55 = vrot.slane %v2184_v28, 4 }
 0x270   : > { %v603_v34 = vsel %vm340_vm1, %v597_v22, %v599_v31  ;;  %v602_v35 = vsel %vm340_vm1, %v599_v31, %v601_v32  ;;  %v604_v46 = vsel %vm340_vm1, %v601_v32, %v597_v22  ;;  %v666_v42 = vrot.slane %v2187_v29, 4 }
 0x271   : > { %1810 = vrot.lane.b32.xlu1 %v1809_v33, %s1919_s10  ;;  %1805 = vrot.lane.b32.xlu0 %v1804_v38, %s1918_s9  ;;  %v2203_v39 = vmul.f32 %v603_v34, %v2045_v36  ;;  %v2206_v40 = vmul.f32 %v602_v35, %v2047_v37  ;;  %v2226_v48 = vmul.f32 %v604_v46, %v2064_v45  ;;  %v667_v49 = vrot.slane %v2190_v30, 4 }
 0x273   : > { %v1829_v44 = vpack.i.bf16 %v2206_v40, %v2203_v39  ;;  %v1801_v51 = vpop.permute.xlu1 %1800  ;;  %v692_v56 = vrot.slane %v2203_v39, 4  ;;  %v693_v57 = vrot.slane %v2206_v40, 4 }
 0x274   : > { %v1803_v0 = vunpack.i.h.bf16 %v1801_v51  ;;  %v1802_v52 = vunpack.i.l.bf16 %v1801_v51 }
 0x275   : > { %1815 = vrot.lane.b32.xlu1 %v1814_v41, %s1918_s9  ;;  %1820 = vrot.lane.b32.xlu0 %v1814_v41, %s1919_s10 }
 0x276   : > { %v633_v54 = vsel %vm380_vm3, %v1802_v52, %v1803_v0 }
 0x277   : > { %v675_v58 = vrot.slane %v633_v54, 4 }
 0x279   : > { %1830 = vrot.lane.b32.xlu1 %v1829_v44, %s1918_s9  ;;  %1825 = vrot.lane.b32.xlu0 %v1824_v2, %s1919_s10 }
 0x27d   : > { %655 = vrot.lane.b32.xlu1 %v2206_v40, %s1919_s10  ;;  %648 = vrot.lane.b32.xlu0 %v2226_v48, %s1918_s9 }
 0x281   : > { %653 = vrot.lane.b32.xlu1 %v2203_v39, %s1919_s10  ;;  %657 = vrot.lane.b32.xlu0 %v2226_v48, %s1919_s10 }
 0x2e3   : > { %v1811_v53 = vpop.permute.xlu1 %1810  ;;  %v1806_v1 = vpop.permute.xlu0 %1805 }
 0x2e4   : > { %v1807_v43 = vunpack.i.l.bf16 %v1806_v1  ;;  %v1813_v3 = vunpack.i.h.bf16 %v1811_v53  ;;  %v1808_v5 = vunpack.i.h.bf16 %v1806_v1  ;;  %v1812_v12 = vunpack.i.l.bf16 %v1811_v53 }
 0x2e5   : > { %v694_v1 = vrot.slane %v2226_v48, 4 }
 0x2e6   : > { %v632_v60 = vsel %vm380_vm3, %v1803_v0, %v1807_v43  ;;  %v634_v61 = vsel %vm380_vm3, %v1807_v43, %v1802_v52 }
 0x2e7   : > { %v1816_v62 = vpop.permute.xlu1 %1815  ;;  %v1821_v11 = vpop.permute.xlu0 %1820  ;;  %v674_v13 = vrot.slane %v634_v61, 4  ;;  %v676_v21 = vrot.slane %v632_v60, 4 }
 0x2e8   : > { %v1818_v6 = vunpack.i.h.bf16 %v1816_v62  ;;  %v1817_v10 = vunpack.i.l.bf16 %v1816_v62  ;;  %v1823_v15 = vunpack.i.h.bf16 %v1821_v11  ;;  %v1822_v20 = vunpack.i.l.bf16 %v1821_v11 }
 0x2ea   : > { %v614_v22 = vsel %vm380_vm3, %v1817_v10, %v1818_v6  ;;  %v615_v23 = vsel %vm380_vm3, %v1808_v5, %v1817_v10  ;;  %v616_v24 = vsel %vm380_vm3, %v1818_v6, %v1808_v5  ;;  %v625_v25 = vsel %vm390_vm4, %v1823_v15, %v1812_v12 }
 0x2eb   : > { %v623_v26 = vsel %vm390_vm4, %v1822_v20, %v1823_v15  ;;  %v624_v27 = vsel %vm390_vm4, %v1812_v12, %v1822_v20  ;;  %v1831_v28 = vpop.permute.xlu1 %1830  ;;  %v700_v29 = vsel %vm698_vm7, %v615_v23, %v666_v42  ;;  %v1826_v32 = vpop.permute.xlu0 %1825  ;;  %v701_v34 = vsel %vm698_vm7, %v614_v22, %v667_v49 }
 0x2ec   : > { %v1833_v30 = vunpack.i.h.bf16 %v1831_v28  ;;  %v1832_v31 = vunpack.i.l.bf16 %v1831_v28  ;;  %v703_v33 = vsel %vm698_vm7, %v623_v26, %v675_v58  ;;  %v1828_v35 = vunpack.i.h.bf16 %v1826_v32 }
 0x2ed   : > { %v1827_v38 = vunpack.i.l.bf16 %v1826_v32  ;;  %v1705_v39 = vpack.c.bf16 %v703_v33, %v700_v29  ;;  %v704_v40 = vsel %vm698_vm7, %v625_v25, %v676_v21  ;;  %v699_v2 = vsel %vm698_vm7, %v616_v24, %v665_v55 }
 0x2ee   : > { %v651_v41 = vsel %vm380_vm3, %v1832_v31, %v1833_v30  ;;  %v1713_v44 = vpack.c.bf16 %v704_v40, %v701_v34  ;;  %v702_v46 = vsel %vm698_vm7, %v624_v27, %v674_v13  ;;  %v642_v51 = vsel %vm390_vm4, %v1828_v35, %v1813_v3 }
 0x2ef   : > { %v641_v0 = vsel %vm390_vm4, %v1813_v3, %v1827_v38  ;;  %v643_v52 = vsel %vm390_vm4, %v1827_v38, %v1828_v35  ;;  %1706 = vmatprep.subr.bf16.mxu0 %v1705_v39  ;;  %v656_v53 = vpop.permute.xlu1 %655  ;;  %v1707_v54 = vpack.c.bf16 %v702_v46, %v699_v2  ;;  %v683_v43 = vrot.slane %v642_v51, 4  ;;  %v649_v55 = vpop.permute.xlu0 %648 }
 0x2f0   : > { %v684_v42 = vrot.slane %v641_v0, 4  ;;  %v685_v49 = vrot.slane %v643_v52, 4  ;;  %1714 = vmatprep.subr.bf16.mxu1 %v1713_v44  ;;  %v650_v58 = vsel %vm380_vm3, %v1833_v30, %v649_v55  ;;  %v652_v60 = vsel %vm380_vm3, %v649_v55, %v1832_v31 }
 0x2f1   : > { %1708 = vmatpush1.bf16.msra.mxu0 %v1707_v54  ;;  %1716 = vmatpush3.bf16.msra.mxu1 %v1713_v44  ;;  %v709_v61 = vsel %vm698_vm7, %v651_v41, %v693_v57  ;;  %v705_v62 = vsel %vm698_vm7, %v2152_v14, %v683_v43  ;;  %v708_v48 = vsel %vm698_vm7, %v652_v60, %v692_v56  ;;  %v2377_v60 = vld [vmem:[%s2628_s3] sm:$0xff] }
 0x2f2   : > { %v710_v3 = vsel %vm698_vm7, %v650_v58, %v694_v1  ;;  %v706_v5 = vsel %vm698_vm7, %v2164_v7, %v684_v42  ;;  %v1711_v6 = vpack.c.bf16 %v708_v48, %v705_v62  ;;  %v707_v12 = vsel %vm698_vm7, %v2155_v4, %v685_v49  ;;  %v254_v4 = vld [vmem:[%s2627_s2 + $0x8] sm:$0xf] }
 0x2f3   : > { %v654_v10 = vpop.permute.xlu1 %653  ;;  %v1709_v11 = vpack.c.bf16 %v709_v61, %v706_v5  ;;  %v658_v13 = vpop.permute.xlu0 %657  ;;  %v1717_v15 = vpack.c.bf16 %v710_v3, %v707_v12 }
 0x2f4   : > { %v659_v57 = vsel %vm390_vm4, %v656_v53, %v658_v13  ;;  %v661_v14 = vsel %vm390_vm4, %v658_v13, %v654_v10  ;;  %v660_v7 = vsel %vm390_vm4, %v654_v10, %v656_v53 }
 0x2f5   : > { %1710 = vmatprep.subr.bf16.mxu0 %v1709_v11  ;;  %1718 = vmatprep.subr.bf16.mxu1 %v1717_v15 }
 0x2f6   : > { %1712 = vmatpush1.bf16.msra.mxu0 %v1711_v6  ;;  %1720 = vmatpush3.bf16.msra.mxu1 %v1717_v15 }
 0x2f7   : > { %1572 = vmatprep.subr.msk.mxu0 %vm698_vm7, %v659_v57  ;;  %1650 = vmatprep.subr.msk.mxu1 %vm698_vm7, %v661_v14 }
 0x2fa   : > { %1573 = vmatpush1.msk.msra.mxu0 %vm698_vm7, %v660_v7  ;;  %1651 = vmatpush3.msk.msra.mxu1 %vm698_vm7, %v661_v14 }
 0x2fb   : > { %1574 = vmatmul.mubr.msk.f32.vlgmr.msra.gmra.mrb[2].mxu0 %vm711_vm6, %v2223_v47  ;;  %1653 = vmatmul.mubr.msk.f32.vlgmr.msra.gmra.mrb[2].mxu1 %vm711_vm6, %v254_v4 }
 0x2fc   : > { %797 = vmatprep.mubr.f32.mxu0 %v1920_v50  ;;  %1665 = vmatprep.mubr.msk.f32.mxu1 %vm711_vm6, %v2377_v60 }
 0x2ff   : > { %1575 = vmatmul.mubr.msk.f32.gmra.mrb[4].mxu0 %vm711_vm6, %v254_v4 }
 0x300   : > { %1093 = vmatprep.mubr.f32.mxu0 %v1920_v50 }
 0x3ce   : > { %v1654_v56 = vpop.f32.mrb[2].mxu1 }
 0x3cf   : > { %v881_v20 = vmul.f32 0.05, %v1654_v56  ;;  %v2308_v21 = vpop.f32.mrb[3].mxu1 }
 0x3d1   : > { %v884_v22 = vmax.f32 %v1654_v56, %v881_v20 }
 0x3d2   : > { %v799_v23 = vpop.f32.mrb[4].mxu0 }
 0x3d3   : > { %v879_v24 = vmul.f32 0.05, %v799_v23  ;;  %v801_v25 = vpop.f32.mrb[5].mxu0  ;;  %v2311_v26 = vmul.f32 %v884_v22, %v2148_v63 }
 0x3d4   : > { %v880_v47 = vmul.f32 0.05, %v801_v25 }
 0x3d5   : > { %v882_v27 = vmax.f32 %v799_v23, %v879_v24  ;;  %892 = vrot.lane.b32.xlu0 %v2311_v26, %s1915_s27 }
 0x3d6   : > { %v883_v29 = vmax.f32 %v801_v25, %v880_v47 }
 0x3d7   : > { %v2316_v28 = vmul.f32 %v882_v27, %v2146_v59 }
 0x3d8   : > { %v2323_v30 = vmul.f32 %v883_v29, %v2157_v8 }
 0x3d9   : > { %900 = vrot.lane.b32.xlu1 %v2316_v28, %s1916_s28  ;;  %888 = vrot.lane.b32.xlu0 %v2316_v28, %s1915_s27  ;;  %v1859_v55 = vpack.i.bf16 %v2316_v28, %v2311_v26 }
 0x3da   : > { %v1834_v31 = vpack.i.bf16 %v2323_v30, %v2316_v28 }
 0x3dd   : > { %890 = vrot.lane.b32.xlu1 %v2323_v30, %s1915_s27  ;;  %902 = vrot.lane.b32.xlu0 %v2323_v30, %s1916_s28 }
 0x3e1   : > { %904 = vrot.lane.b32.xlu1 %v2311_v26, %s1916_s28  ;;  %1835 = vrot.lane.b32.xlu0 %v1834_v31, %s1918_s9 }
 0x447   : > { %v893_v32 = vpop.permute.xlu0 %892 }
 0x44b   : > { %v901_v33 = vpop.permute.xlu1 %900  ;;  %v889_v34 = vpop.permute.xlu0 %888 }
 0x44c   : > { %v896_v35 = vsel %vm300_vm0, %v893_v32, %v889_v34 }
 0x44d   : > { %v2337_v38 = vmul.f32 %v896_v35, %v2018_v17 }
 0x44f   : > { %v891_v39 = vpop.permute.xlu1 %890  ;;  %v903_v44 = vpop.permute.xlu0 %902  ;;  %v1844_v2 = vpack.i.bf16 %v2323_v30, %v2337_v38  ;;  %v1839_v0 = vpack.i.bf16 %v2337_v38, %v2311_v26  ;;  %v969_v12 = vrot.slane %v2337_v38, 4 }
 0x450   : > { %v894_v40 = vsel %vm300_vm0, %v891_v39, %v893_v32  ;;  %v895_v41 = vsel %vm300_vm0, %v889_v34, %v891_v39  ;;  %v907_v52 = vsel %vm340_vm1, %v901_v33, %v903_v44 }
 0x451   : > { %v898_v46 = vmul.f32 %v895_v41, %v2020_v18  ;;  %v2347_v51 = vmul.f32 %v894_v40, %v2022_v19  ;;  %1845 = vrot.lane.b32.xlu0 %v1844_v2, %s1919_s10  ;;  %1840 = vrot.lane.b32.xlu1 %v1839_v0, %s1918_s9  ;;  %v2359_v43 = vmul.f32 %v907_v52, %v2045_v36 }
 0x453   : > { %v905_v53 = vpop.permute.xlu1 %904  ;;  %v1854_v54 = vpack.i.bf16 %v2347_v51, %v898_v46  ;;  %v1836_v62 = vpop.permute.xlu0 %1835  ;;  %v970_v13 = vrot.slane %v898_v46, 4  ;;  %v971_v15 = vrot.slane %v2347_v51, 4  ;;  %v996_v57 = vrot.slane %v2359_v43, 4 }
 0x454   : > { %v906_v1 = vsel %vm340_vm1, %v903_v44, %v905_v53  ;;  %v908_v58 = vsel %vm340_vm1, %v905_v53, %v901_v33  ;;  %v1838_v48 = vunpack.i.h.bf16 %v1836_v62  ;;  %v1837_v3 = vunpack.i.l.bf16 %v1836_v62 }
 0x455   : > { %v2362_v42 = vmul.f32 %v906_v1, %v2047_v37  ;;  %1850 = vrot.lane.b32.xlu0 %v1854_v54, %s1918_s9  ;;  %1855 = vrot.lane.b32.xlu1 %v1854_v54, %s1919_s10  ;;  %v2380_v61 = vmul.f32 %v908_v58, %v2064_v45 }
 0x456   : > { %v937_v6 = vsel %vm380_vm3, %v1837_v3, %v1838_v48 }
 0x457   : > { %v1864_v49 = vpack.i.bf16 %v2362_v42, %v2359_v43  ;;  %v997_v14 = vrot.slane %v2362_v42, 4  ;;  %v979_v7 = vrot.slane %v937_v6, 4 }
 0x459   : > { %1865 = vrot.lane.b32.xlu0 %v1864_v49, %s1918_s9  ;;  %1860 = vrot.lane.b32.xlu1 %v1859_v55, %s1919_s10 }
 0x45d   : > { %959 = vrot.lane.b32.xlu0 %v2362_v42, %s1919_s10  ;;  %952 = vrot.lane.b32.xlu1 %v2380_v61, %s1918_s9 }
 0x461   : > { %957 = vrot.lane.b32.xlu0 %v2359_v43, %s1919_s10  ;;  %961 = vrot.lane.b32.xlu1 %v2380_v61, %s1919_s10 }
 0x4c3   : > { %v1846_v5 = vpop.permute.xlu0 %1845  ;;  %v1841_v10 = vpop.permute.xlu1 %1840 }
 0x4c4   : > { %v1842_v11 = vunpack.i.l.bf16 %v1841_v10  ;;  %v1843_v22 = vunpack.i.h.bf16 %v1841_v10  ;;  %v1848_v23 = vunpack.i.h.bf16 %v1846_v5  ;;  %v1847_v29 = vunpack.i.l.bf16 %v1846_v5 }
 0x4c6   : > { %v936_v4 = vsel %vm380_vm3, %v1838_v48, %v1842_v11  ;;  %v938_v56 = vsel %vm380_vm3, %v1842_v11, %v1837_v3  ;;  %v998_v11 = vrot.slane %v2380_v61, 4 }
 0x4c7   : > { %v1851_v20 = vpop.permute.xlu0 %1850  ;;  %v1856_v24 = vpop.permute.xlu1 %1855  ;;  %v978_v27 = vrot.slane %v938_v56, 4  ;;  %v980_v33 = vrot.slane %v936_v4, 4 }
 0x4c8   : > { %v1853_v25 = vunpack.i.h.bf16 %v1851_v20  ;;  %v1852_v47 = vunpack.i.l.bf16 %v1851_v20  ;;  %v1858_v31 = vunpack.i.h.bf16 %v1856_v24  ;;  %v1857_v32 = vunpack.i.l.bf16 %v1856_v24 }
 0x4ca   : > { %v920_v34 = vsel %vm380_vm3, %v1853_v25, %v1843_v22  ;;  %v918_v35 = vsel %vm380_vm3, %v1852_v47, %v1853_v25  ;;  %v919_v38 = vsel %vm380_vm3, %v1843_v22, %v1852_v47  ;;  %v927_v39 = vsel %vm390_vm4, %v1857_v32, %v1858_v31 }
 0x4cb   : > { %v928_v40 = vsel %vm390_vm4, %v1847_v29, %v1857_v32  ;;  %v929_v41 = vsel %vm390_vm4, %v1858_v31, %v1847_v29  ;;  %v1866_v44 = vpop.permute.xlu0 %1865  ;;  %v1003_v2 = vsel %vm698_vm7, %v919_v38, %v970_v13  ;;  %v1861_v46 = vpop.permute.xlu1 %1860  ;;  %v1006_v52 = vsel %vm698_vm7, %v927_v39, %v979_v7 }
 0x4cc   : > { %v1868_v51 = vunpack.i.h.bf16 %v1866_v44  ;;  %v1867_v0 = vunpack.i.l.bf16 %v1866_v44  ;;  %v1004_v53 = vsel %vm698_vm7, %v918_v35, %v971_v15  ;;  %v1863_v54 = vunpack.i.h.bf16 %v1861_v46 }
 0x4cd   : > { %v1862_v1 = vunpack.i.l.bf16 %v1861_v46  ;;  %v1721_v43 = vpack.c.bf16 %v1006_v52, %v1003_v2  ;;  %v1007_v42 = vsel %vm698_vm7, %v929_v41, %v980_v33  ;;  %v1002_v58 = vsel %vm698_vm7, %v920_v34, %v969_v12 }
 0x4ce   : > { %v955_v49 = vsel %vm380_vm3, %v1867_v0, %v1868_v51  ;;  %v1729_v55 = vpack.c.bf16 %v1007_v42, %v1004_v53  ;;  %v1005_v62 = vsel %vm698_vm7, %v928_v40, %v978_v27  ;;  %v946_v3 = vsel %vm390_vm4, %v1863_v54, %v1848_v23 }
 0x4cf   : > { %v945_v48 = vsel %vm390_vm4, %v1848_v23, %v1862_v1  ;;  %v947_v5 = vsel %vm390_vm4, %v1862_v1, %v1863_v54  ;;  %1722 = vmatprep.subr.bf16.mxu0 %v1721_v43  ;;  %v960_v6 = vpop.permute.xlu0 %959  ;;  %v1723_v10 = vpack.c.bf16 %v1005_v62, %v1002_v58  ;;  %v987_v13 = vrot.slane %v946_v3, 4  ;;  %v953_v12 = vpop.permute.xlu1 %952 }
 0x4d0   : > { %v988_v15 = vrot.slane %v945_v48, 4  ;;  %v989_v7 = vrot.slane %v947_v5, 4  ;;  %1730 = vmatprep.subr.bf16.mxu1 %v1729_v55  ;;  %v954_v4 = vsel %vm380_vm3, %v1868_v51, %v953_v12  ;;  %v956_v56 = vsel %vm380_vm3, %v953_v12, %v1867_v0 }
 0x4d1   : > { %1724 = vmatpush1.bf16.msra.mxu0 %v1723_v10  ;;  %1732 = vmatpush3.bf16.msra.mxu1 %v1729_v55  ;;  %v1012_v20 = vsel %vm698_vm7, %v955_v49, %v997_v14  ;;  %v1008_v22 = vsel %vm698_vm7, %v2316_v28, %v987_v13  ;;  %v1011_v61 = vsel %vm698_vm7, %v956_v56, %v996_v57 }
 0x4d2   : > { %v1013_v23 = vsel %vm698_vm7, %v954_v4, %v998_v11  ;;  %v1009_v24 = vsel %vm698_vm7, %v2323_v30, %v988_v15  ;;  %v1727_v25 = vpack.c.bf16 %v1011_v61, %v1008_v22  ;;  %v1010_v29 = vsel %vm698_vm7, %v2311_v26, %v989_v7  ;;  %v256_v26 = vld [vmem:[%s2628_s3 + $0x8] sm:$0x3] }
 0x4d3   : > { %v958_v47 = vpop.permute.xlu0 %957  ;;  %v1725_v27 = vpack.c.bf16 %v1012_v20, %v1009_v24  ;;  %v962_v31 = vpop.permute.xlu1 %961  ;;  %v1733_v32 = vpack.c.bf16 %v1013_v23, %v1010_v29 }
 0x4d4   : > { %v963_v14 = vsel %vm390_vm4, %v960_v6, %v962_v31  ;;  %v965_v28 = vsel %vm390_vm4, %v962_v31, %v958_v47  ;;  %v964_v30 = vsel %vm390_vm4, %v958_v47, %v960_v6 }
 0x4d5   : > { %1726 = vmatprep.subr.bf16.mxu0 %v1725_v27  ;;  %1734 = vmatprep.subr.bf16.mxu1 %v1733_v32 }
 0x4d6   : > { %1728 = vmatpush1.bf16.msra.mxu0 %v1727_v25  ;;  %1736 = vmatpush3.bf16.msra.mxu1 %v1733_v32 }
 0x4d7   : > { %1579 = vmatprep.subr.msk.mxu0 %vm698_vm7, %v963_v14  ;;  %1663 = vmatprep.subr.msk.mxu1 %vm698_vm7, %v965_v28 }
 0x4da   : > { %1580 = vmatpush1.msk.msra.mxu0 %vm698_vm7, %v964_v30  ;;  %1664 = vmatpush3.msk.msra.mxu1 %vm698_vm7, %v965_v28 }
 0x4db   : > { %1581 = vmatmul.mubr.msk.f32.vlgmr.msra.gmra.mrb[2].mxu0 %vm711_vm6, %v2377_v60  ;;  %1666 = vmatmul.mubr.msk.f32.vlgmr.msra.gmra.mrb[4].mxu1 %vm711_vm6, %v256_v26 }
 0x4dc   : > { %1099 = vmatprep.mubr.f32.mxu0 %v1920_v50  ;;  %1741 = vmatprep.subr.bf16.mxu1 %v1917_v16 }
 0x4dd   : > { %1674 = vmatprep.mubr.msk.f32.mxu1 %vm1921_vm2, %v1920_v50 }
 0x4df   : > { %1582 = vmatmul.mubr.msk.f32.gmra.mrb[6].mxu0 %vm711_vm6, %v256_v26 }
 0x4e0   : > { %1422 = vmatprep.mubr.f32.mxu0 %v1920_v50 }
 0x5ae   : > { %v1667_v57 = vpop.f32.mrb[4].mxu1 }
 0x5af   : > { %v1186_v33 = vmul.f32 0.05, %v1667_v57  ;;  %v1172_v34 = vpop.f32.mrb[5].mxu1 }
 0x5b0   : > { %v2465_v35 = vadd.f32 %v1172_v34, %v2308_v21 }
 0x5b1   : > { %v1189_v60 = vmax.f32 %v1667_v57, %v1186_v33 }
 0x5b2   : > { %v1101_v38 = vpop.f32.mrb[6].mxu0 }
 0x5b3   : > { %v1184_v39 = vmul.f32 0.05, %v1101_v38  ;;  %v1103_v40 = vpop.f32.mrb[7].mxu0  ;;  %v2468_v41 = vmul.f32 %v1189_v60, %v2148_v63 }
 0x5b4   : > { %v1185_v16 = vmul.f32 0.05, %v1103_v40 }
 0x5b5   : > { %v1187_v44 = vmax.f32 %v1101_v38, %v1184_v39  ;;  %1197 = vrot.lane.b32.xlu1 %v2468_v41, %s1915_s27 }
 0x5b6   : > { %v1188_v46 = vmax.f32 %v1103_v40, %v1185_v16 }
 0x5b7   : > { %v2473_v2 = vmul.f32 %v1187_v44, %v2146_v59 }
 0x5b8   : > { %v2480_v21 = vmul.f32 %v1188_v46, %v2157_v8 }
 0x5b9   : > { %1205 = vrot.lane.b32.xlu0 %v2473_v2, %s1916_s28  ;;  %1193 = vrot.lane.b32.xlu1 %v2473_v2, %s1915_s27 }
 0x5ba   : > { %v1869_v59 = vpack.i.bf16 %v2480_v21, %v2473_v2 }
 0x5bd   : > { %1195 = vrot.lane.b32.xlu0 %v2480_v21, %s1915_s27  ;;  %1207 = vrot.lane.b32.xlu1 %v2480_v21, %s1916_s28 }
 0x5c1   : > { %1209 = vrot.lane.b32.xlu0 %v2468_v41, %s1916_s28  ;;  %1870 = vrot.lane.b32.xlu1 %v1869_v59, %s1919_s10 }
 0x627   : > { %v1198_v63 = vpop.permute.xlu1 %1197 }
 0x62b   : > { %v1206_v51 = vpop.permute.xlu0 %1205  ;;  %v1194_v0 = vpop.permute.xlu1 %1193 }
 0x62c   : > { %v1201_v8 = vsel %vm300_vm0, %v1198_v63, %v1194_v0 }
 0x62d   : > { %v2494_v52 = vmul.f32 %v1201_v8, %v2018_v17 }
 0x62f   : > { %v1196_v53 = vpop.permute.xlu0 %1195  ;;  %v1208_v54 = vpop.permute.xlu1 %1207  ;;  %v1874_v1 = vpack.i.bf16 %v2494_v52, %v2468_v41  ;;  %v1274_v56 = vrot.slane %v2494_v52, 6 }
 0x630   : > { %v1212_v43 = vsel %vm340_vm1, %v1206_v51, %v1208_v54  ;;  %v1199_v49 = vsel %vm300_vm0, %v1196_v53, %v1198_v63  ;;  %v1200_v55 = vsel %vm300_vm0, %v1194_v0, %v1196_v53 }
 0x631   : > { %1875 = vrot.lane.b32.xlu0 %v1874_v1, %s1919_s10  ;;  %v2516_v3 = vmul.f32 %v1212_v43, %v2045_v36  ;;  %v2519_v5 = vmul.f32 %v1200_v55, %v2020_v18  ;;  %v2522_v6 = vmul.f32 %v1199_v49, %v2022_v19 }
 0x633   : > { %v1210_v42 = vpop.permute.xlu0 %1209  ;;  %v1884_v36 = vpack.i.bf16 %v2522_v6, %v2519_v5  ;;  %v1871_v18 = vpop.permute.xlu1 %1870  ;;  %v1275_v20 = vrot.slane %v2519_v5, 6  ;;  %v1276_v22 = vrot.slane %v2522_v6, 6  ;;  %v1319_v24 = vrot.slane %v2516_v3, 2 }
 0x634   : > { %v1211_v17 = vsel %vm340_vm1, %v1208_v54, %v1210_v42  ;;  %v1213_v58 = vsel %vm340_vm1, %v1210_v42, %v1206_v51 }
 0x635   : > { %v2510_v62 = vmul.f32 %v1211_v17, %v2047_v37  ;;  %v2513_v48 = vmul.f32 %v1213_v58, %v2064_v45  ;;  %v1873_v37 = vunpack.i.h.bf16 %v1871_v18  ;;  %v1872_v45 = vunpack.i.l.bf16 %v1871_v18 }
 0x637   : > { %v1879_v10 = vpack.i.bf16 %v2494_v52, %v2513_v48  ;;  %v1894_v11 = vpack.i.bf16 %v2510_v62, %v2516_v3  ;;  %v1251_v15 = vsel %vm390_vm4, %v1872_v45, %v1873_v37  ;;  %v1320_v27 = vrot.slane %v2510_v62, 2 }
 0x638   : > { %v1301_v29 = vrot.slane %v1251_v15, 6  ;;  %v1321_v14 = vrot.slane %v2513_v48, 2 }
 0x639   : > { %1880 = vrot.lane.b32.xlu1 %v1879_v10, %s1918_s9  ;;  %1895 = vrot.lane.b32.xlu0 %v1894_v11, %s1918_s9 }
 0x63d   : > { %1885 = vrot.lane.b32.xlu1 %v1884_v36, %s1919_s10  ;;  %1900 = vrot.lane.b32.xlu0 %v1884_v36, %s1918_s9 }
 0x641   : > { %1890 = vrot.lane.b32.xlu1 %v1869_v59, %s1918_s9  ;;  %1239 = vrot.lane.b32.xlu0 %v2468_v41, %s1918_s9  ;;  %v1336_v59 = vsel %vm1325_vm8, %v2473_v2, %v1301_v29 }
 0x645   : > { %1262 = vrot.lane.b32.xlu1 %v2516_v3, %s1919_s10  ;;  %1264 = vrot.lane.b32.xlu0 %v2510_v62, %s1919_s10 }
 0x649   : > { %1266 = vrot.lane.b32.xlu1 %v2513_v48, %s1919_s10 }
 0x6a3   : > { %v1876_v19 = vpop.permute.xlu0 %1875 }
 0x6a4   : > { %v1877_v13 = vunpack.i.l.bf16 %v1876_v19  ;;  %v1878_v28 = vunpack.i.h.bf16 %v1876_v19 }
 0x6a6   : > { %v1250_v7 = vsel %vm390_vm4, %v1873_v37, %v1877_v13  ;;  %v1252_v12 = vsel %vm390_vm4, %v1877_v13, %v1872_v45 }
 0x6a7   : > { %v1302_v31 = vrot.slane %v1250_v7, 6  ;;  %v1303_v32 = vrot.slane %v1252_v12, 6 }
 0x6a9   : > { %v1338_v63 = vsel %vm1325_vm8, %v2468_v41, %v1303_v32  ;;  %v1337_v0 = vsel %vm1325_vm8, %v2480_v21, %v1302_v31 }
 0x6ab   : > { %v1881_v4 = vpop.permute.xlu1 %1880  ;;  %v1896_v61 = vpop.permute.xlu0 %1895 }
 0x6ac   : > { %v1882_v23 = vunpack.i.l.bf16 %v1881_v4  ;;  %v1898_v25 = vunpack.i.h.bf16 %v1896_v61  ;;  %v1897_v47 = vunpack.i.l.bf16 %v1896_v61  ;;  %v1883_v40 = vunpack.i.h.bf16 %v1881_v4 }
 0x6ae   : > { %v1260_v30 = vsel %vm380_vm3, %v1897_v47, %v1898_v25  ;;  %v1259_v26 = vsel %vm380_vm3, %v1898_v25, %v1882_v23  ;;  %v1261_v34 = vsel %vm380_vm3, %v1882_v23, %v1897_v47 }
 0x6af   : > { %v1886_v57 = vpop.permute.xlu1 %1885  ;;  %v1311_v33 = vrot.slane %v1260_v30, 4  ;;  %v1312_v60 = vrot.slane %v1259_v26, 4  ;;  %v1901_v38 = vpop.permute.xlu0 %1900  ;;  %v1310_v8 = vrot.slane %v1261_v34, 4  ;;  %v1905_v34 = vld [vmem:[%s1973_s26 + $0x10] sm:$0xff] }
 0x6b0   : > { %v1888_v39 = vunpack.i.h.bf16 %v1886_v57  ;;  %v1903_v16 = vunpack.i.h.bf16 %v1901_v38  ;;  %v1902_v44 = vunpack.i.l.bf16 %v1901_v38  ;;  %v1887_v46 = vunpack.i.l.bf16 %v1886_v57  ;;  %v1904_v57 = vld [vmem:[%s1973_s26] sm:$0xff]  ;;  %v1906_v38 = vld [vmem:[%s1973_s26 + $0x8] sm:$0xff] }
 0x6b1   : > { %v1340_v43 = vsel %vm698_vm7, %v1337_v0, %v1311_v33  ;;  %v1341_v42 = vsel %vm698_vm7, %v1338_v63, %v1312_v60  ;;  %v1339_v18 = vsel %vm698_vm7, %v1336_v59, %v1310_v8 }
 0x6b2   : > { %v1234_v51 = vsel %vm390_vm4, %v1888_v39, %v1878_v28  ;;  %v1223_v52 = vsel %vm380_vm3, %v1902_v44, %v1903_v16  ;;  %v1224_v53 = vsel %vm380_vm3, %v1883_v40, %v1902_v44  ;;  %v1225_v54 = vsel %vm380_vm3, %v1903_v16, %v1883_v40 }
 0x6b3   : > { %v1891_v2 = vpop.permute.xlu1 %1890  ;;  %v1285_v1 = vrot.slane %v1234_v51, 4  ;;  %v1232_v41 = vsel %vm390_vm4, %v1887_v46, %v1888_v39  ;;  %v1233_v21 = vsel %vm390_vm4, %v1878_v28, %v1887_v46  ;;  %v1240_v55 = vpop.permute.xlu0 %1239  ;;  %v1326_v62 = vsel %vm1325_vm8, %v1225_v54, %v1274_v56 }
 0x6b4   : > { %v1284_v49 = vrot.slane %v1232_v41, 4  ;;  %v1893_v17 = vunpack.i.h.bf16 %v1891_v2  ;;  %v1892_v58 = vunpack.i.l.bf16 %v1891_v2  ;;  %v1327_v48 = vsel %vm1325_vm8, %v1224_v53, %v1275_v20 }
 0x6b5   : > { %v1328_v3 = vsel %vm1325_vm8, %v1223_v52, %v1276_v22  ;;  %v1283_v5 = vrot.slane %v1233_v21, 4  ;;  %v1343_v13 = vsel %vm1332_vm9, %v1340_v43, %v1320_v27  ;;  %v1344_v12 = vsel %vm1332_vm9, %v1341_v42, %v1321_v14 }
 0x6b6   : > { %v1241_v6 = vsel %vm380_vm3, %v1893_v17, %v1240_v55  ;;  %v1242_v10 = vsel %vm380_vm3, %v1892_v58, %v1893_v17  ;;  %v1243_v11 = vsel %vm380_vm3, %v1240_v55, %v1892_v58  ;;  %v1330_v15 = vsel %vm698_vm7, %v1327_v48, %v1284_v49 }
 0x6b7   : > { %v1263_v36 = vpop.permute.xlu1 %1262  ;;  %v1294_v19 = vrot.slane %v1241_v6, 2  ;;  %v1292_v37 = vrot.slane %v1243_v11, 2  ;;  %v1293_v45 = vrot.slane %v1242_v10, 2  ;;  %v1331_v7 = vsel %vm698_vm7, %v1328_v3, %v1285_v1  ;;  %v1265_v23 = vpop.permute.xlu0 %1264 }
 0x6b8   : > { %v1329_v4 = vsel %vm698_vm7, %v1326_v62, %v1283_v5  ;;  %v1342_v61 = vsel %vm1332_vm9, %v1339_v18, %v1319_v24  ;;  %v257_v24 = vld [vmem:[%s2629_s4] sm:$0xff]  ;;  %v1269_v14 = vsel %vm390_vm4, %v1263_v36, %v1265_v23 }
 0x6b9   : > { %v1334_v56 = vsel %vm1332_vm9, %v1330_v15, %v1293_v45  ;;  %v1335_v20 = vsel %vm1332_vm9, %v1331_v7, %v1294_v19  ;;  %v1333_v22 = vsel %vm1332_vm9, %v1329_v4, %v1292_v37 }
 0x6ba   : > { %v1737_v47 = vpack.c.bf16 %v1343_v13, %v1334_v56  ;;  %v1742_v27 = vpack.c.bf16 %v1344_v12, %v1335_v20  ;;  %v1739_v29 = vpack.c.bf16 %v1342_v61, %v1333_v22 }
 0x6bb   : > { %v1267_v25 = vpop.permute.xlu1 %1266 }
 0x6bc   : > { %v1268_v31 = vsel %vm390_vm4, %v1265_v23, %v1267_v25  ;;  %1738 = vmatprep.subr.bf16.mxu0 %v1737_v47  ;;  %1743 = vmatpush3.bf16.msra.mxu1 %v1742_v27  ;;  %v1270_v32 = vsel %vm390_vm4, %v1267_v25, %v1263_v36 }
 0x6bd   : > { %1740 = vmatpush1.bf16.msra.mxu0 %v1739_v29  ;;  %1672 = vmatprep.subr.mxu1 %v1920_v50 }
 0x6be   : > { %1586 = vmatprep.subr.msk.mxu0 %vm1325_vm8, %v1268_v31 }
 0x6c0   : > { %1673 = vmatpush3.msk.msra.mxu1 %vm1325_vm8, %v1270_v32 }
 0x6c1   : > { %1587 = vmatpush1.msk.msra.mxu0 %vm1325_vm8, %v1269_v14  ;;  %1675 = vmatmul.mubr.msk.f32.vlgmr.msra.gmra.mrb[6].mxu1 %vm1345_vm10, %v257_v24 }
 0x6c2   : > { %1588 = vmatmul.mubr.msk.f32.vlgmr.msra.gmra.mrb[2].mxu0 %vm1345_vm10, %v257_v24 }
 0x794   : > { %v1495_v50 = vpop.f32.mrb[6].mxu1 }
 0x795   : > { %v1501_v28 = vadd.f32 %v1495_v50, %v2465_v35  ;;  %v1424_v30 = vpop.f32.mrb[2].mxu0  ;;  %v1676_v26 = vpop.f32.mrb[7].mxu1 }
 0x796   : > { %v1502_v9 = vadd.f32 %v1904_v57, %v1424_v30  ;;  %v1426_v33 = vpop.f32.mrb[3].mxu0 }
 0x797   : > { %v1504_v60 = vadd.f32 %v1905_v34, %v1501_v28  ;;  %v1503_v39 = vadd.f32 %v1906_v38, %v1426_v33 }
 0x798   : > { %1505 = vst [vmem:[%s251_s29] sm:$0xff] %v1502_v9 }
 0x799   : > { %1507 = vst [vmem:[%s251_s29 + $0x10] sm:$0xff] %v1504_v60  ;;  %1506 = vst [vmem:[%s251_s29 + $0x8] sm:$0xff] %v1503_v39 }
 0x79a PF: > { %s16_s21 = sadd.s32 1, %s1913_s21  }
 0x79b   : > { %p13_p4 = scmp.ge.s32.totalorder %s16_s21, 4  }
 0x79d   :  { %15 = sbr.rel (!%p13_p4) target bundleno = 1 (0x1), region = 74 }

</bundles_post_ra>
